<compile_context>
chip_gen: v7x
topology: tpu7x:2x2x1
jax: 0.10.0
libtpu: 0.0.40
codegen_flags: <defaults>
</compile_context>

<pallas_src>
import functools

import jax
import jax.numpy as jnp
from jax.experimental import pallas as pl
from jax.experimental.pallas import tpu as pltpu

_LANE = 128
_SUB = 8
_BLOCK_GRAN = 32                      # sublane granularity safe for f32/bf16/int8
_MAX_BLOCK_ROWS = 8192                # (8192,128) f32 = 4 MiB per input block
_VMEM_LIMIT_BYTES = 48 * 1024 * 1024  # < 64 MiB physical on v7x, ample on v5e/v6e


def _cdiv(a, b):
    return -(-a // b)


def _round_up(a, m):
    return ((a + m - 1) // m) * m


def _focal_r_kernel(x_ref, t_ref, out_ref, *, choice, beta, gamma,
                    total_rows, block_rows, last_block, needs_mask,
                    scalar_target):
    # Upcast in-kernel (free VPU work under the HBM bound; avoids wrapper copies).
    x = x_ref[...].astype(jnp.float32)
    if scalar_target:
        t = t_ref[0, 0]                       # f32 scalar in SMEM, broadcasts
    else:
        t = t_ref[...].astype(jnp.float32)

    d = x - t
    ad = jnp.abs(d)

    if choice == 'mse':
        # 2*sigmoid(beta*ad) - 1 == tanh(0.5*beta*ad): one EUP op, no divide,
        # and no 2*sigma-1 cancellation for small |x-t|.
        mod = jnp.tanh((0.5 * beta) * ad)
        if gamma != 1:
            mod = mod ** gamma
        loss = d * d * mod
    elif choice == 'l1':
        # sigmoid(beta*ad) == 0.5*(1 + tanh(0.5*beta*ad))
        mod = 0.5 + 0.5 * jnp.tanh((0.5 * beta) * ad)
        if gamma != 1:
            mod = mod ** gamma
        loss = ad * mod
    elif choice == 'huber':
        loss = jnp.where(ad < beta, (0.5 / beta) * (ad * ad), ad - 0.5 * beta)
    else:
        raise ValueError(
            "The hyperparameter 'choice' of FocalR must be one of ['mse', 'l1', 'huber'].")

    def _store(vals):
        # Per-block partial sum: reduce only along the sublane-group axis (pure
        # VPU adds), keep a vreg-shaped (8,128) partial.  Full reduction happens
        # in the wrapper on a tiny (num_blocks,8,128) array.
        partial = jnp.sum(vals.reshape(block_rows // _SUB, _SUB, _LANE), axis=0)
        out_ref[...] = partial.reshape(1, _SUB, _LANE)

    if needs_mask:
        pid = pl.program_id(0)

        @pl.when(pid != last_block)
        def _():
            _store(loss)

        @pl.when(pid == last_block)
        def _():
            # The last block may overrun the (rows,128) input; the overrun VMEM
            # region holds undefined data (possibly NaN/Inf), so use a
            # select-style mask (NOT a multiply) built from a (block_rows,1)
            # sublane iota.
            rid = last_block * block_rows + jax.lax.broadcasted_iota(
                jnp.int32, (block_rows, 1), 0)
            _store(jnp.where(rid < total_rows, loss, 0.0))
    else:
        _store(loss)


def _tail_loss_sum(x, t, choice, beta, gamma):
    """Pure-jnp loss sum for the <=127-element non-128-aligned tail."""
    d = x - t
    ad = jnp.abs(d)
    if choice == 'mse':
        mod = jnp.tanh((0.5 * beta) * ad)
        if gamma != 1:
            mod = mod ** gamma
        loss = d * d * mod
    elif choice == 'l1':
        mod = 0.5 + 0.5 * jnp.tanh((0.5 * beta) * ad)
        if gamma != 1:
            mod = mod ** gamma
        loss = ad * mod
    else:  # huber
        loss = jnp.where(ad < beta, (0.5 / beta) * (ad * ad), ad - 0.5 * beta)
    return jnp.sum(loss, dtype=jnp.float32)


def focal_r_loss(inputs, targets, choice='mse'):
    """Pallas-backed FocalR forward. Returns a scalar float32 loss."""
    if choice not in ('mse', 'l1', 'huber'):
        raise ValueError(
            "The hyperparameter 'choice' of FocalR must be one of ['mse', 'l1', 'huber'].")

    inputs = jnp.asarray(inputs)
    targets = jnp.asarray(targets)
    if inputs.ndim >= 2:
        inputs = inputs[..., 0]

    n = inputs.size
    if n == 0:
        return jnp.float32(0.0)

    # Defaults used by FocalR.forward (it does not forward self.beta/self.gamma).
    beta = 1.0 if choice == 'huber' else 0.2
    gamma = 1

    scalar_target = (targets.size == 1)

    x_flat = inputs.reshape(-1)                       # free: contiguous reshape
    if scalar_target:
        t_flat = None
        t_smem = targets.reshape(1, 1).astype(jnp.float32)   # one element -> SMEM
    else:
        # Free when targets already matches inputs' (post-slice) shape.
        t_flat = jnp.broadcast_to(targets, inputs.shape).reshape(-1)
        t_smem = None

    rows = n // _LANE
    n_main = rows * _LANE
    total = jnp.float32(0.0)

    if rows > 0:
        x2 = (x_flat if n_main == n else x_flat[:n_main]).reshape(rows, _LANE)

        # Block size: as large as useful (amortizes the ~0.35us/step overhead),
        # but keep >= 4 blocks when possible so the "parallel" grid axis can be
        # sharded across v7x's two TensorCores and the pipeline has depth.
        rows_cover = _round_up(rows, _BLOCK_GRAN)
        quarter = _round_up(_cdiv(rows, 4), _BLOCK_GRAN)
        block_rows = min(_MAX_BLOCK_ROWS, rows_cover, max(_BLOCK_GRAN, quarter))
        num_blocks = _cdiv(rows, block_rows)

        kernel = functools.partial(
            _focal_r_kernel, choice=choice, beta=beta, gamma=gamma,
            total_rows=rows, block_rows=block_rows,
            last_block=num_blocks - 1,
            needs_mask=(rows % block_rows) != 0,
            scalar_target=scalar_target)

        x_spec = pl.BlockSpec((block_rows, _LANE), lambda i: (i, 0))
        if scalar_target:
            operands = (x2, t_smem)
            t_spec = pl.BlockSpec(memory_space=pltpu.MemorySpace.SMEM)
        else:
            t2 = (t_flat if n_main == n else t_flat[:n_main]).reshape(rows, _LANE)
            operands = (x2, t2)
            t_spec = pl.BlockSpec((block_rows, _LANE), lambda i: (i, 0))

        partials = pl.pallas_call(
            kernel,
            out_shape=jax.ShapeDtypeStruct((num_blocks, _SUB, _LANE), jnp.float32),
            grid_spec=pltpu.PrefetchScalarGridSpec(
                num_scalar_prefetch=0,
                grid=(num_blocks,),
                in_specs=[x_spec, t_spec],
                out_specs=pl.BlockSpec((1, _SUB, _LANE), lambda i: (i, 0, 0)),
            ),
            compiler_params=pltpu.CompilerParams(
                dimension_semantics=("parallel",),   # independent blocks
                vmem_limit_bytes=_VMEM_LIMIT_BYTES),
        )(*operands)

        total = total + jnp.sum(partials, dtype=jnp.float32)

    if n_main < n:
        # <=127-element tail: negligible next to the main stream, do it in XLA
        # instead of padding/copying the whole input.
        x_tail = x_flat[n_main:].astype(jnp.float32)
        if scalar_target:
            t_tail = targets.astype(jnp.float32).reshape(())
        else:
            t_tail = t_flat[n_main:].astype(jnp.float32)
        total = total + _tail_loss_sum(x_tail, t_tail, choice, beta, gamma)

    return total / jnp.float32(n)


class FocalR:
    """Mirror of the PyTorch module; holds config, forward calls the kernel."""

    def __init__(self, para_dict=None):
        cfg = para_dict['cfg']['loss']['FocalR']
        self.beta = cfg['BETA']      # kept for parity; forward uses helper defaults
        self.gamma = cfg['GAMMA']
        self.choice = cfg['choice']

    def forward(self, inputs, targets, **kwargs):
        return focal_r_loss(inputs, targets, choice=self.choice)

    def __call__(self, inputs, targets, **kwargs):
        return self.forward(inputs, targets, **kwargs)

    def update(self, epoch):
        pass


# -------- pure-JAX reference (exact PyTorch formulas, for correctness check) --------
def _ref_loss(inputs, targets, choice):
    inputs = jnp.asarray(inputs)
    targets = jnp.asarray(targets)
    if inputs.ndim >= 2:
        inputs = inputs[..., 0]
    x = inputs.astype(jnp.float32)
    t = targets.astype(jnp.float32)
    d = x - t
    ad = jnp.abs(d)
    if choice == 'mse':
        loss = d * d * (2.0 * jax.nn.sigmoid(0.2 * ad) - 1.0)
    elif choice == 'l1':
        loss = ad * jax.nn.sigmoid(0.2 * ad)
    else:  # huber
        loss = jnp.where(ad < 1.0, 0.5 * ad * ad / 1.0, ad - 0.5)
    return jnp.mean(loss)


if __name__ == "__main__":
    key = jax.random.PRNGKey(0)
    k1, k2, k3, k4, k5 = jax.random.split(key, 5)

    # (B, D) inputs -> forward slices [..., 0]; B chosen so n % 128 != 0
    # (exercises the XLA tail path + masked single block).
    B, D = 300, 4
    inputs = jax.random.normal(k1, (B, D), dtype=jnp.float32) * 3.0
    targets = jax.random.normal(k2, (B,), dtype=jnp.float32) * 3.0

    for choice in ('mse', 'l1', 'huber'):
        para_dict = {'cfg': {'loss': {'FocalR': {'BETA': 0.2, 'GAMMA': 1, 'choice': choice}}}}
        module = FocalR(para_dict)
        out = jax.block_until_ready(module(inputs, targets))
        ref = _ref_loss(inputs, targets, choice)
        assert jnp.allclose(out, ref, rtol=2e-5, atol=1e-6), (choice, float(out), float(ref))

    # 1-D inputs, length a multiple of 128 (no tail, no mask), multiple blocks,
    # scalar target -> SMEM path.
    n2 = 128 * 64
    x_s = jax.random.normal(k3, (n2,), dtype=jnp.float32) * 2.0
    t_s = jnp.float32(0.5)
    out = jax.block_until_ready(focal_r_loss(x_s, t_s, choice='l1'))
    ref = _ref_loss(x_s, t_s, 'l1')
    assert jnp.allclose(out, ref, rtol=2e-5, atol=1e-6), (float(out), float(ref))

    # Multiple blocks + masked last block + non-aligned tail, full targets.
    n3 = 128 * 70 + 50
    x_m = jax.random.normal(k4, (n3,), dtype=jnp.float32) * 3.0
    t_m = jax.random.normal(k5, (n3,), dtype=jnp.float32) * 3.0
    out = jax.block_until_ready(focal_r_loss(x_m, t_m, choice='huber'))
    ref = _ref_loss(x_m, t_m, 'huber')
    assert jnp.allclose(out, ref, rtol=2e-5, atol=1e-6), (float(out), float(ref))

    # bf16 inputs: streamed in native dtype, upcast in-kernel.
    x_b = jax.random.normal(k4, (640,), dtype=jnp.bfloat16)
    t_b = jax.random.normal(k2, (640,), dtype=jnp.bfloat16)
    out = jax.block_until_ready(focal_r_loss(x_b, t_b, choice='mse'))
    ref = _ref_loss(x_b, t_b, 'mse')
    assert jnp.allclose(out, ref, rtol=1e-4, atol=1e-6), (float(out), float(ref))

    print("KERNEL_OK")
</pallas_src>

<mosaic_0001>
module attributes {stable_mosaic.version = 11 : i64} {
  func.func @_focal_r_kernel(%arg0: i32, %arg1: memref<32x128xf32, #tpu.memory_space<vmem>>, %arg2: memref<32x128xf32, #tpu.memory_space<vmem>>, %arg3: memref<1x8x128xf32, #tpu.memory_space<vmem>>) attributes {dimension_semantics = [#tpu.dimension_semantics<parallel>], iteration_bounds = array<i64: 1>, scalar_prefetch = 0 : i64, scratch_operands = 0 : i64, tpu.core_type = #tpu.core_type<tc>, window_params = [{transform_indices = @transform_0, window_bounds = array<i64: 32, 128>}, {transform_indices = @transform_1, window_bounds = array<i64: 32, 128>}, {transform_indices = @transform_2, window_bounds = array<i64: 1, 8, 128>}]} {
    %c0 = arith.constant 0 : index
    %c0_0 = arith.constant 0 : index
    %0 = vector.load %arg1[%c0, %c0_0] : memref<32x128xf32, #tpu.memory_space<vmem>>, vector<32x128xf32>
    %c0_1 = arith.constant 0 : index
    %c0_2 = arith.constant 0 : index
    %1 = vector.load %arg2[%c0_1, %c0_2] : memref<32x128xf32, #tpu.memory_space<vmem>>, vector<32x128xf32>
    %2 = arith.subf %0, %1 : vector<32x128xf32>
    %3 = math.absf %2 : vector<32x128xf32>
    %cst = arith.constant 1.000000e-01 : f32
    %4 = vector.broadcast %cst : f32 to vector<32x128xf32>
    %5 = arith.mulf %4, %3 : vector<32x128xf32>
    %6 = math.tanh %5 : vector<32x128xf32>
    %7 = arith.mulf %2, %2 : vector<32x128xf32>
    %8 = arith.mulf %7, %6 : vector<32x128xf32>
    %c0_i32 = arith.constant 0 : i32
    %9 = arith.cmpi ne, %arg0, %c0_i32 : i32
    %10 = arith.extui %9 : i1 to i32
    %c0_i32_3 = arith.constant 0 : i32
    %11 = arith.cmpi ne, %10, %c0_i32_3 : i32
    scf.if %11 {
      %15 = vector.shape_cast %8 : vector<32x128xf32> to vector<4x8x128xf32>
      %cst_6 = arith.constant dense<0.000000e+00> : vector<8x128xf32>
      %16 = vector.multi_reduction <add>, %15, %cst_6 [0] : vector<4x8x128xf32> to vector<8x128xf32>
      %17 = vector.shape_cast %16 : vector<8x128xf32> to vector<1x8x128xf32>
      %c0_7 = arith.constant 0 : index
      %c0_8 = arith.constant 0 : index
      %c0_9 = arith.constant 0 : index
      %18 = vector.load %arg3[%c0_7, %c0_8, %c0_9] : memref<1x8x128xf32, #tpu.memory_space<vmem>>, vector<1x8x128xf32>
      tpu.vector_store %arg3[%c0_7, %c0_8, %c0_9], %17 {strides = array<i32>} : memref<1x8x128xf32, #tpu.memory_space<vmem>>, vector<1x8x128xf32>,
    } else {
    }
    %c0_i32_4 = arith.constant 0 : i32
    %12 = arith.cmpi eq, %arg0, %c0_i32_4 : i32
    %13 = arith.extui %12 : i1 to i32
    %c0_i32_5 = arith.constant 0 : i32
    %14 = arith.cmpi ne, %13, %c0_i32_5 : i32
    scf.if %14 {
      %15 = tpu.iota {dimensions = array<i32: 0>} : vector<32x1xi32>
      %c0_i32_6 = arith.constant 0 : i32
      %16 = vector.broadcast %c0_i32_6 : i32 to vector<32x1xi32>
      %17 = arith.addi %16, %15 : vector<32x1xi32>
      %c2_i32 = arith.constant 2 : i32
      %18 = vector.broadcast %c2_i32 : i32 to vector<32x1xi32>
      %19 = arith.cmpi slt, %17, %18 : vector<32x1xi32>
      %cst_7 = arith.constant 0.000000e+00 : f32
      %20 = vector.shape_cast %19 : vector<32x1xi1> to vector<32x1xi1>
      %21 = vector.broadcast %20 : vector<32x1xi1> to vector<32x128xi1>
      %22 = vector.broadcast %cst_7 : f32 to vector<32x128xf32>
      %23 = arith.select %21, %8, %22 : vector<32x128xi1>, vector<32x128xf32>
      %24 = vector.shape_cast %23 : vector<32x128xf32> to vector<4x8x128xf32>
      %cst_8 = arith.constant dense<0.000000e+00> : vector<8x128xf32>
      %25 = vector.multi_reduction <add>, %24, %cst_8 [0] : vector<4x8x128xf32> to vector<8x128xf32>
      %26 = vector.shape_cast %25 : vector<8x128xf32> to vector<1x8x128xf32>
      %c0_9 = arith.constant 0 : index
      %c0_10 = arith.constant 0 : index
      %c0_11 = arith.constant 0 : index
      %27 = vector.load %arg3[%c0_9, %c0_10, %c0_11] : memref<1x8x128xf32, #tpu.memory_space<vmem>>, vector<1x8x128xf32>
      tpu.vector_store %arg3[%c0_9, %c0_10, %c0_11], %26 {strides = array<i32>} : memref<1x8x128xf32, #tpu.memory_space<vmem>>, vector<1x8x128xf32>,
    } else {
    }
    return
  }
  func.func @transform_0(%arg0: i32) -> (i32, i32) {
    %c0_i32 = arith.constant 0 : i32
    %c0_i32_0 = arith.constant 0 : i32
    return %arg0, %c0_i32 : i32, i32
  }
  func.func @transform_1(%arg0: i32) -> (i32, i32) {
    %c0_i32 = arith.constant 0 : i32
    %c0_i32_0 = arith.constant 0 : i32
    return %arg0, %c0_i32 : i32, i32
  }
  func.func @transform_2(%arg0: i32) -> (i32, i32, i32) {
    %c0_i32 = arith.constant 0 : i32
    %c0_i32_0 = arith.constant 0 : i32
    %c0_i32_1 = arith.constant 0 : i32
    return %arg0, %c0_i32, %c0_i32_0 : i32, i32, i32
  }
}

</mosaic_0001>

<bundles_post_ra>
// kernel: tpu_custom_call.1
= control target key start
LH: loop header
LB: loop body
LE: loop exit
PB: predicated region body
PF: predicated region fallthrough
CT: control target
= control target key end

     0   :  { %7 = vsyncpa [#allocation3], 0  ;;  %s210_s0 = inlined_call_operand.hbm [shape: f32[2,128], index: 0, kind: input, shape index: {}]   ;;  %s211_s1 = inlined_call_operand.vmem [shape: f32[2,128], index: 1, kind: input, shape index: {}]   ;;  %s212_s2 = inlined_call_operand.hbm [shape: f32[1,8,128], index: 2, kind: output, shape index: {}]  }
   0x1   :  { %8 = vsyncpa [#allocation4], 0 }
   0x2   :  { %13 = vsyncadd [#allocation3], 480  ;;  %s164_s9 = smov [#allocation2]   ;;  %s116_s13 = scalar_lea.hbm %s210_s0, 32 }
   0x3   :  { %s14_s10 = sshll.u32 %s164_s9, 4  ;;  %p117_p0 = scmp.ne.s32.totalorder %s210_s0, %s116_s13  ;;  %s15_s10 = int_to_ptr.vmem [resolvable:$true] %s14_s10 }
   0x4   :  { %p120_p1 = scmp.lt.u32.totalorder %s116_s13, %s210_s0 }
   0x6   :  { %p122_p2 = pnand %p120_p1, %p117_p0 }
   0x8   :  { %125 = shalt.err (!%p122_p2)
}
   0x9   :  { %s126_s18 = scalar_lea.vmem %s15_s10, 32  ;;  %s130_s19 = scalar_lea.vmem %s15_s10, 512 }
   0xa   :  { %p127_p3 = scmp.ne.s32.totalorder %s15_s10, %s126_s18  ;;  %p131_p4 = scmp.lt.s32.totalorder %s15_s10, %s15_s10 }
   0xb   :  { %p132_p5 = scmp.lt.s32.totalorder %s130_s19, %s126_s18 }
   0xd   :  { %p133_p6 = por %p132_p5, %p131_p4 }
   0xf   :  { %p134_p7 = pnand %p133_p6, %p127_p3 }
  0x11   :  { %137 = shalt.err (!%p134_p7)
}
  0x12   :  { %s165_s20 = smov 32   ;;  %s166_s21 = smov 2  }
  0x13   :  { %20 = dma.hbm_to_vmem [thread:$0]  %s210_s0, 32, %s15_s10, [#allocation3], %s165_s20, %s165_s20, %s166_s21  }
  0x14   :  { %160 = dma.done.wait [#allocation3], 512  }
  0x15   :  { %161 = vsyncadd [#allocation3], 4294966784  ;;  %v26_v0 = vld [vmem:[#allocation2] sm:$0xff]  ;;  %v70_v5 = vlaneseq  ;;  %s167_s26 = smov [#allocation5]  }
  0x16   :  { %v30_v1 = vld [vmem:[%s211_s1] sm:$0xff]  ;;  %s101_s27 = sshll.u32 %s167_s26, 4  ;;  %s102_s27 = int_to_ptr.vmem [resolvable:$true] %s101_s27 }
  0x17   :  { %v34_v2 = vsub.f32 %v26_v0, %v30_v1  ;;  %v71_v6 = vshrl.u32 %v70_v5, 7  ;;  %s138_s0 = scalar_lea.vmem %s102_s27, 128  ;;  %p143_p9 = scmp.lt.s32.totalorder %s102_s27, %s102_s27 }
  0x18   :  { %p139_p8 = scmp.ne.s32.totalorder %s102_s27, %s138_s0  ;;  %p144_p10 = scmp.lt.s32.totalorder %s138_s0, %s138_s0 }
  0x19   :  { %v38_v3 = vand.u32 2147483647, %v34_v2  ;;  %v50_v7 = vmul.f32 %v34_v2, %v34_v2  ;;  %vm75_vm0 = vcmp.lt.s32.totalorder %v71_v6, 2 }
  0x1a   :  { %p145_p11 = por %p144_p10, %p143_p9 }
  0x1b   :  { %v42_v4 = vmul.f32 0.1, %v38_v3 }
  0x1c   :  { %p146_p12 = pnand %p145_p11, %p139_p8 }
  0x1d   :  { %114 = vtanh.f32 %v42_v4 }
  0x27   :  { %v115_v8 = vpop.eup %114 }
  0x28   :  { %v54_v9 = vmul.f32 %v115_v8, %v50_v7 }
  0x2a   :  { %v87_v10 = vsel %vm75_vm0, %v54_v9, 0.0 }
  0x2b   :  { %94 = vst [vmem:[#allocation5] sm:$0xff] %v87_v10 }
  0x2c   :  { %149 = shalt.err (!%p146_p12)
}
  0x2d   :  { %s150_s29 = scalar_lea.hbm %s212_s2, 128 }
  0x2e   :  { %p151_p13 = scmp.ne.s32.totalorder %s212_s2, %s150_s29  ;;  %p154_p0 = scmp.lt.u32.totalorder %s150_s29, %s212_s2 }
  0x30   :  { %p156_p1 = pnand %p154_p0, %p151_p13 }
  0x32   :  { %159 = shalt.err (!%p156_p1)
}
  0x33   :  { %104 = dma.vmem_to_hbm [thread:$0]  %s102_s27, 128, %s212_s2, [#allocation4]  }
  0x34   :  { %162 = dma.done.wait [#allocation4], 128  }
  0x35   :  { %163 = vsyncadd [#allocation4], 4294967168 }
  0x36   :  { %108 = vsyncpa [#allocation3], 1 }
  0x37   :  { %109 = vsyncpa [#allocation4], 1 }

</bundles_post_ra>
